<compile_context>
chip_gen: v6e
topology: v6e:2x2x1
jax: 0.10.0
libtpu: 0.0.40
codegen_flags: <defaults>
</compile_context>

<pallas_src>
import jax
import jax.numpy as jnp
from jax.experimental import pallas as pl
from jax.experimental.pallas import tpu as pltpu


def _round_up(x, m):
    return (x + m - 1) // m * m


def _cdiv(a, b):
    return -(-a // b)


# ------------------------------- kernels ----------------------------------- #
def _collapsed_kernel(x_ref, w_ref, b_ref, o_ref):
    # y = x @ W + b'   where W = (W2 @ W1).T and b' = b1 @ W2.T + b2 (folded).
    xb = x_ref[...].astype(w_ref.dtype)            # in-kernel f32 -> bf16 cast
    y = jnp.dot(xb, w_ref[...], preferred_element_type=jnp.float32)
    o_ref[...] = (y + b_ref[...]).astype(o_ref.dtype)


def _two_matmul_kernel(x_ref, w1t_ref, w2t_ref, b_ref, o_ref):
    # h = x @ W1.T ;  y = h @ W2.T + b'   (bf16 MXU inputs, f32 accumulation)
    xb = x_ref[...].astype(w1t_ref.dtype)
    h = jnp.dot(xb, w1t_ref[...], preferred_element_type=jnp.float32)
    y = jnp.dot(h.astype(w2t_ref.dtype), w2t_ref[...],
                preferred_element_type=jnp.float32)
    o_ref[...] = (y + b_ref[...]).astype(o_ref.dtype)


# --------------------------- one-time parameter prep ----------------------- #
def prepare_linear_ae_params(w1, b1, w2, b2, *, compute_dtype=jnp.bfloat16):
    """w1: (K, dim), b1: (K,), w2: (dim, K), b2: (dim,) — nn.Linear layouts."""
    K, dim = w1.shape
    assert w2.shape == (dim, K) and b1.shape == (K,) and b2.shape == (dim,)
    Kp, Dp = _round_up(K, 128), _round_up(dim, 128)

    # Fold the first bias through the second (linear) layer.
    b_fold = (b1.astype(jnp.float32) @ w2.T.astype(jnp.float32)
              + b2.astype(jnp.float32))
    b_pad = jnp.zeros((1, Dp), jnp.float32).at[0, :dim].set(b_fold)

    # Collapse to a single matmul whenever it is not more work than two.
    collapsed = dim * Dp <= dim * Kp + Kp * Dp
    params = {"dim": dim, "K": K, "Kp": Kp, "Dp": Dp, "b": b_pad,
              "collapsed": collapsed, "compute_dtype": compute_dtype}
    if collapsed:
        w = (w2.astype(jnp.float32) @ w1.astype(jnp.float32)).T      # (dim, dim)
        params["w"] = jnp.zeros((dim, Dp), compute_dtype).at[:, :dim].set(
            w.astype(compute_dtype))
    else:
        params["w1t"] = jnp.zeros((dim, Kp), compute_dtype).at[:, :K].set(
            w1.T.astype(compute_dtype))
        params["w2t"] = jnp.zeros((Kp, Dp), compute_dtype).at[:K, :dim].set(
            w2.T.astype(compute_dtype))
    return params


def _vmem_capacity_bytes():
    try:
        cap = int(pltpu.get_tpu_info().vmem_capacity_bytes)
        if cap > 0:
            return cap
    except Exception:
        pass
    return 64 * 1024 * 1024     # conservative fallback (v7x-sized VMEM)


# ------------------------------- forward ----------------------------------- #
def linear_ae_forward(x, params, *, bm=512, out_dtype=jnp.float32):
    """x: (B, dim). Returns (B, dim) in out_dtype (default f32)."""
    dim, Kp, Dp = params["dim"], params["Kp"], params["Dp"]
    collapsed = params["collapsed"]
    b_pad = params["b"]
    compute_dtype = params["compute_dtype"]
    B, in_dim = x.shape
    assert in_dim == dim

    wbytes = jnp.dtype(compute_dtype).itemsize
    xbytes = jnp.dtype(x.dtype).itemsize
    obytes = jnp.dtype(out_dtype).itemsize

    # Generation-aware VMEM budgets (v5e/v6e: 128 MiB, v7x: 64 MiB physical).
    vmem_cap = _vmem_capacity_bytes()
    vmem_limit = int(min(vmem_cap - 12 * 2**20, int(vmem_cap * 0.80)))
    vmem_budget = max(16 * 2**20, vmem_limit - 10 * 2**20)

    def footprint(tile, dn):
        if collapsed:
            weights = dim * dn * wbytes
        else:
            weights = (dim * Kp + Kp * dn) * wbytes
        biases = dn * 4
        x_io = tile * dim * xbytes
        o_io = tile * dn * obytes
        dbuf = 2 * (weights + biases + x_io + o_io)   # default double-buffering
        temps = tile * dim * wbytes + tile * dn * 4   # x bf16 cast, y f32
        if not collapsed:
            temps += tile * Kp * (4 + wbytes)         # h f32 + h bf16 re-cast
        return dbuf + temps

    # Batch tile: cap by batch, shrink to fit the VMEM budget, then re-balance
    # so padding waste is bounded (<8 rows per tile) instead of a full tile.
    bm = max(8, min(_round_up(bm, 8), _round_up(B, 8)))
    while bm > 8 and footprint(bm, Dp) > vmem_budget:
        bm = max(8, (bm // 2) // 8 * 8)
    # TODO(synk): add contraction-dim (K / dim) tiling for layers so large that
    # resident weights alone exceed the VMEM budget (no graceful fallback yet).
    n_rows = _cdiv(B, bm)
    bm = _round_up(_cdiv(B, n_rows), 8)
    Bp = n_rows * bm

    # Give both v7x TensorCores work when there is only one row tile.
    n_cols = 2 if (n_rows == 1 and Dp % 256 == 0) else 1
    dn = Dp // n_cols

    # Only pad batch rows; x keeps its dtype and full-extent feature dim.
    x_in = x if Bp == B else jnp.pad(x, ((0, Bp - B), (0, 0)))

    x_spec = pl.BlockSpec((bm, dim), lambda i, j: (i, 0))
    b_spec = pl.BlockSpec((1, dn), lambda i, j: (0, j))
    out_spec = pl.BlockSpec((bm, dn), lambda i, j: (i, j))

    if collapsed:
        kernel = _collapsed_kernel
        in_specs = [x_spec,
                    pl.BlockSpec((dim, dn), lambda i, j: (0, j)),
                    b_spec]
        operands = (x_in, params["w"], b_pad)
    else:
        kernel = _two_matmul_kernel
        in_specs = [x_spec,
                    pl.BlockSpec((dim, Kp), lambda i, j: (0, 0)),
                    pl.BlockSpec((Kp, dn), lambda i, j: (0, j)),
                    b_spec]
        operands = (x_in, params["w1t"], params["w2t"], b_pad)

    out = pl.pallas_call(
        kernel,
        out_shape=jax.ShapeDtypeStruct((Bp, Dp), out_dtype),
        grid_spec=pltpu.PrefetchScalarGridSpec(
            num_scalar_prefetch=0,
            grid=(n_rows, n_cols),
            in_specs=in_specs,
            out_specs=out_spec,
        ),
        compiler_params=pltpu.CompilerParams(
            dimension_semantics=("parallel", "parallel"),
            vmem_limit_bytes=vmem_limit),
    )(*operands)

    return out[:B, :dim]


# ------------------------------- reference --------------------------------- #
def linear_ae_reference(x, w1, b1, w2, b2):
    h = x @ w1.T + b1
    return h @ w2.T + b2


def _make_case(key, B, dim, K):
    kx, k1, kb1, k2, kb2 = jax.random.split(key, 5)
    x = jax.random.normal(kx, (B, dim), dtype=jnp.float32)
    # nn.Linear: weight (out_features, in_features), bias (out_features,)
    w1 = jax.random.normal(k1, (K, dim), dtype=jnp.float32) * 0.05
    b1 = jax.random.normal(kb1, (K,), dtype=jnp.float32) * 0.05
    w2 = jax.random.normal(k2, (dim, K), dtype=jnp.float32) * 0.05
    b2 = jax.random.normal(kb2, (dim,), dtype=jnp.float32) * 0.05
    return x, w1, b1, w2, b2


if __name__ == "__main__":
    key = jax.random.PRNGKey(0)
    cases = [
        (8, 64, 32),    # linear_AE(dim=64, K=32): collapsed single-matmul path
        (13, 520, 32),  # two-matmul path, non-128 feature dim, padded batch rows
        (8, 256, 16),   # collapsed path with the 2-way column split (dual-TC)
    ]
    keys = jax.random.split(key, len(cases))
    all_ok = True
    for (B, dim, K), k in zip(cases, keys):
        x, w1, b1, w2, b2 = _make_case(k, B, dim, K)
        params = prepare_linear_ae_params(w1, b1, w2, b2)   # one-time prep
        out = jax.block_until_ready(linear_ae_forward(x, params))
        ref = linear_ae_reference(x, w1, b1, w2, b2)
        assert out.shape == (B, dim)
        # bf16 MXU inputs with f32 accumulation -> small quantization error.
        all_ok &= bool(jnp.allclose(out, ref, atol=5e-2, rtol=5e-2))
    assert all_ok
    print("KERNEL_OK")
</pallas_src>

<mosaic_0001>
module attributes {stable_mosaic.version = 11 : i64} {
  func.func @_collapsed_kernel(%arg0: i32, %arg1: i32, %arg2: memref<8x64xf32, #tpu.memory_space<vmem>>, %arg3: memref<64x128xbf16, #tpu.memory_space<vmem>>, %arg4: memref<1x128xf32, #tpu.memory_space<vmem>>, %arg5: memref<8x128xf32, #tpu.memory_space<vmem>>) attributes {dimension_semantics = [#tpu.dimension_semantics<parallel>, #tpu.dimension_semantics<parallel>], iteration_bounds = array<i64: 1, 1>, scalar_prefetch = 0 : i64, scratch_operands = 0 : i64, tpu.core_type = #tpu.core_type<tc>, window_params = [{transform_indices = @transform_0, window_bounds = array<i64: 8, 64>}, {transform_indices = @transform_1, window_bounds = array<i64: 64, 128>}, {transform_indices = @transform_2, window_bounds = array<i64: 1, 128>}, {transform_indices = @transform_3, window_bounds = array<i64: 8, 128>}]} {
    %c0 = arith.constant 0 : index
    %c0_0 = arith.constant 0 : index
    %0 = vector.load %arg2[%c0, %c0_0] : memref<8x64xf32, #tpu.memory_space<vmem>>, vector<8x64xf32>
    %1 = arith.truncf %0 : vector<8x64xf32> to vector<8x64xbf16>
    %c0_1 = arith.constant 0 : index
    %c0_2 = arith.constant 0 : index
    %2 = vector.load %arg3[%c0_1, %c0_2] : memref<64x128xbf16, #tpu.memory_space<vmem>>, vector<64x128xbf16>
    %cst = arith.constant dense<0.000000e+00> : vector<8x128xf32>
    %3 = tpu.matmul %1, %2, %cst {dimension_numbers = #tpu.dot_dimension_numbers<[1], [0], [0], [1], [0, 0, 1, 1], [], []>} : vector<8x64xbf16>, vector<64x128xbf16>, vector<8x128xf32> -> vector<8x128xf32>
    %c0_3 = arith.constant 0 : index
    %c0_4 = arith.constant 0 : index
    %4 = vector.load %arg4[%c0_3, %c0_4] : memref<1x128xf32, #tpu.memory_space<vmem>>, vector<1x128xf32>
    %5 = vector.broadcast %4 : vector<1x128xf32> to vector<8x128xf32>
    %6 = arith.addf %3, %5 : vector<8x128xf32>
    %c0_5 = arith.constant 0 : index
    %c0_6 = arith.constant 0 : index
    %7 = vector.load %arg5[%c0_5, %c0_6] : memref<8x128xf32, #tpu.memory_space<vmem>>, vector<8x128xf32>
    tpu.vector_store %arg5[%c0_5, %c0_6], %6 {strides = array<i32>} : memref<8x128xf32, #tpu.memory_space<vmem>>, vector<8x128xf32>,
    return
  }
  func.func @transform_0(%arg0: i32, %arg1: i32) -> (i32, i32) {
    %c0_i32 = arith.constant 0 : i32
    %c0_i32_0 = arith.constant 0 : i32
    return %arg0, %c0_i32 : i32, i32
  }
  func.func @transform_1(%arg0: i32, %arg1: i32) -> (i32, i32) {
    %c0_i32 = arith.constant 0 : i32
    %c0_i32_0 = arith.constant 0 : i32
    return %c0_i32, %arg1 : i32, i32
  }
  func.func @transform_2(%arg0: i32, %arg1: i32) -> (i32, i32) {
    %c0_i32 = arith.constant 0 : i32
    %c0_i32_0 = arith.constant 0 : i32
    return %c0_i32, %arg1 : i32, i32
  }
  func.func @transform_3(%arg0: i32, %arg1: i32) -> (i32, i32) {
    %c0_i32 = arith.constant 0 : i32
    return %arg0, %arg1 : i32, i32
  }
}

</mosaic_0001>

<bundles_post_ra>
// kernel: tpu_custom_call.1
= control target key start
LH: loop header
LB: loop body
LE: loop exit
PB: predicated region body
PF: predicated region fallthrough
CT: control target
= control target key end

     0   :  { %8 = vsyncpa [#allocation3], 0  ;;  %s283_s0 = inlined_call_operand.hbm [shape: f32[8,64], index: 0, kind: input, shape index: {}]   ;;  %s284_s1 = inlined_call_operand.hbm [shape: bf16[64,128], index: 1, kind: input, shape index: {}]   ;;  %s285_s2 = inlined_call_operand.vmem [shape: f32[1,128], index: 2, kind: input, shape index: {}]   ;;  %s286_s3 = inlined_call_operand.hbm [shape: f32[8,128], index: 3, kind: output, shape index: {}]  }
   0x1   :  { %9 = vsyncpa [#allocation6], 0 }
   0x2   :  { %10 = vsyncpa [#allocation4], 0  ;;  %s244_s12 = smov [#allocation2]   ;;  %s245_s14 = smov [#allocation5]  }
   0x3   :  { %s17_s13 = sshll.u32 %s244_s12, 4  ;;  %s26_s15 = sshll.u32 %s245_s14, 4  ;;  %s18_s13 = int_to_ptr.vmem [resolvable:$true] %s17_s13  ;;  %s27_s15 = int_to_ptr.vmem [resolvable:$true] %s26_s15 }
   0x4   :  { %s186_s16 = scalar_lea.vmem %s18_s13, 128  ;;  %p191_p1 = scmp.lt.s32.totalorder %s18_s13, %s18_s13 }
   0x5   :  { %p187_p0 = scmp.ne.s32.totalorder %s18_s13, %s186_s16  ;;  %p192_p2 = scmp.lt.s32.totalorder %s186_s16, %s186_s16 }
   0x7   :  { %p193_p3 = por %p192_p2, %p191_p1 }
   0x9   :  { %p194_p4 = pnand %p193_p3, %p187_p0 }
   0xb   :  { %197 = shalt.err (!%p194_p4)
}
   0xc   :  { %20 = dma.hbm_to_vmem [thread:$0]  %s283_s0, 128, %s18_s13, [#allocation3]  }
   0xd   :  { %s206_s19 = scalar_lea.vmem %s27_s15, 512  ;;  %p211_p6 = scmp.lt.s32.totalorder %s27_s15, %s27_s15 }
   0xe   :  { %p207_p5 = scmp.ne.s32.totalorder %s27_s15, %s206_s19  ;;  %p212_p7 = scmp.lt.s32.totalorder %s206_s19, %s206_s19 }
  0x10   :  { %p213_p8 = por %p212_p7, %p211_p6 }
  0x12   :  { %p214_p9 = pnand %p213_p8, %p207_p5 }
  0x14   :  { %217 = shalt.err (!%p214_p9)
}
  0x15   :  { %s246_s20 = smov 64   ;;  %s247_s21 = smov 4  }
  0x16   :  { %32 = dma.hbm_to_vmem [thread:$0]  %s284_s1, 512, %s27_s15, [#allocation6], %s246_s20, %s246_s20, %s247_s21  }
  0x17   :  { %238 = dma.done.wait [#allocation3], 128  }
  0x18   :  { %239 = vsyncadd [#allocation3], 4294967168 }
  0x19   :  { %240 = dma.done.wait [#allocation6], 512  }
  0x1a   :  { %241 = vsyncadd [#allocation6], 4294966784  ;;  %v248_v0 = vmov 0.0   ;;  %vm249_vm0 = vmmov 0   ;;  %v174_v1 = vld [vmem:[#allocation5 + $0x18] sm:$0xff]   ;;  %v175_v2 = vld [vmem:[#allocation5 + $0x10] sm:$0xff]  }
  0x1b   :  { %155 = vmatprep.subr.bf16.mxu0 %v248_v0  ;;  %163 = vmatprep.mubr.msk.bf16.mxu0 %vm249_vm0, %v248_v0  ;;  %v176_v3 = vld [vmem:[#allocation5 + $0x8] sm:$0xff]   ;;  %v177_v4 = vld [vmem:[#allocation5] sm:$0xff]   ;;  %v42_v5 = vld [vmem:[#allocation2] sm:$0xff]  ;;  %vm83_vm1 = vcmask 523264   ;;  %s250_s24 = smov [#allocation7]  }
  0x1c   :  { %156 = vmatpush3.bf16.msra.mxu0 %v174_v1  ;;  %v43_v6 = vpack.c.bf16 %v42_v5, %v42_v5  ;;  %v144_v7 = vld [vmem:[%s285_s2] ss:$0 sm:$0xff]  ;;  %s134_s25 = sshll.u32 %s250_s24, 4  ;;  %s135_s25 = int_to_ptr.vmem [resolvable:$true] %s134_s25 }
  0x1d   :  { %157 = vmatprep.subr.bf16.mxu0 %v248_v0  ;;  %s218_s26 = scalar_lea.vmem %s135_s25, 128  ;;  %p223_p11 = scmp.lt.s32.totalorder %s135_s25, %s135_s25 }
  0x1e   :  { %p219_p10 = scmp.ne.s32.totalorder %s135_s25, %s218_s26  ;;  %p224_p12 = scmp.lt.s32.totalorder %s218_s26, %s218_s26 }
  0x20   :  { %158 = vmatpush3.bf16.msra.mxu0 %v175_v2  ;;  %p225_p13 = por %p224_p12, %p223_p11 }
  0x21   :  { %159 = vmatprep.subr.bf16.mxu0 %v248_v0 }
  0x22   :  { %p226_p0 = pnand %p225_p13, %p219_p10 }
  0x24   :  { %160 = vmatpush3.bf16.msra.mxu0 %v176_v3 }
  0x25   :  { %161 = vmatprep.subr.bf16.mxu0 %v248_v0 }
  0x28   :  { %162 = vmatpush3.bf16.msra.mxu0 %v177_v4 }
  0x2b   :  { %164 = vmatmul.mubr.msk.bf16.vlgmr.msra.gmra.mxu0 %vm83_vm1, %v43_v6 }
  0xeb   :  { %v121_v8 = vpop.f32.mrf.mxu0 }
  0xec   :  { %v122_v9 = vadd.f32 %v144_v7, %v121_v8 }
  0xed   :  { %v165_v10 = vpop.f32.mrf.mxu0 }
  0xee   :  { %127 = vst [vmem:[#allocation7] sm:$0xff] %v122_v9 }
  0xef   :  { %v124_v11 = vpop.f32.mrf.mxu0 }
  0xf0   :  { %229 = shalt.err (!%p226_p0)
}
  0xf1   :  { %137 = dma.vmem_to_hbm [thread:$0]  %s135_s25, 128, %s286_s3, [#allocation4]   ;;  %v166_v12 = vpop.f32.mrf.mxu0 }
  0xf2   :  { %242 = dma.done.wait [#allocation4], 128  }
  0xf3   :  { %243 = vsyncadd [#allocation4], 4294967168 }
  0xf4   :  { %141 = vsyncpa [#allocation3], 1 }
  0xf5   :  { %142 = vsyncpa [#allocation6], 1 }
  0xf6   :  { %143 = vsyncpa [#allocation4], 1 }

</bundles_post_ra>
